<compile_context>
chip_gen: v7x
topology: tpu7x:2x2x1
jax: 0.10.0
libtpu: 0.0.40
codegen_flags: <defaults>
</compile_context>

<pallas_src>
import functools

import jax
import jax.numpy as jnp
from jax.experimental import pallas as pl
from jax.experimental.pallas import tpu as pltpu

LANE = 128
DEFAULT_TILE = 512
VMEM_LIMIT_BYTES = 32 * 1024 * 1024  # safe on v5e/v6e/v7x; raises v5e's 16 MiB default


def _round_up(x, m):
    return ((x + m - 1) // m) * m


# --------------------- kernel 1: Z = X @ W^T (row-tiled) --------------------- #
def xw_kernel(x_ref, wt_ref, z_ref):
    z_ref[...] = jnp.dot(
        x_ref[...], wt_ref[...], preferred_element_type=jnp.float32
    ).astype(z_ref.dtype)


def feature_transform(x_p, wt_p, tm, out_dtype):
    n_p, cin_p = x_p.shape
    cout_p = wt_p.shape[1]
    return pl.pallas_call(
        xw_kernel,
        out_shape=jax.ShapeDtypeStruct((n_p, cout_p), out_dtype),
        grid_spec=pltpu.PrefetchScalarGridSpec(
            num_scalar_prefetch=0,
            grid=(n_p // tm,),
            in_specs=[
                pl.BlockSpec((tm, cin_p), lambda i: (i, 0)),
                pl.BlockSpec((cin_p, cout_p), lambda i: (0, 0)),
            ],
            out_specs=pl.BlockSpec((tm, cout_p), lambda i: (i, 0)),
        ),
        compiler_params=pltpu.CompilerParams(
            dimension_semantics=("parallel",),
            vmem_limit_bytes=VMEM_LIMIT_BYTES,
        ),
    )(x_p, wt_p)


# ---------- kernel 2: out = A_hat @ Z + b (+ ReLU), tiled (rows, k) ---------- #
def propagate_kernel(a_ref, z_ref, b_ref, o_ref, acc_ref, *, relu):
    k = pl.program_id(1)

    @pl.when(k == 0)
    def _():
        acc_ref[...] = jnp.zeros_like(acc_ref)

    acc_ref[...] += jnp.dot(
        a_ref[...], z_ref[...], preferred_element_type=jnp.float32
    )

    @pl.when(k == pl.num_programs(1) - 1)
    def _():
        out = acc_ref[...] + b_ref[...].astype(jnp.float32)
        if relu:
            out = jnp.maximum(out, 0.0)
        o_ref[...] = out.astype(o_ref.dtype)


def propagate(a_p, z_p, b_p, tm, tk, relu, out_dtype):
    n_p = a_p.shape[0]
    c_p = z_p.shape[1]
    kern = functools.partial(propagate_kernel, relu=relu)
    return pl.pallas_call(
        kern,
        out_shape=jax.ShapeDtypeStruct((n_p, c_p), out_dtype),
        grid_spec=pltpu.PrefetchScalarGridSpec(
            num_scalar_prefetch=0,
            grid=(n_p // tm, n_p // tk),
            in_specs=[
                pl.BlockSpec((tm, tk), lambda i, k: (i, k)),     # A_hat tile
                pl.BlockSpec((tk, c_p), lambda i, k: (k, 0)),    # Z row-block
                pl.BlockSpec((1, c_p), lambda i, k: (0, 0)),     # bias
            ],
            out_specs=pl.BlockSpec((tm, c_p), lambda i, k: (i, 0)),
            scratch_shapes=[pltpu.VMEM((tm, c_p), jnp.float32)],
        ),
        compiler_params=pltpu.CompilerParams(
            dimension_semantics=("parallel", "arbitrary"),
            vmem_limit_bytes=VMEM_LIMIT_BYTES,
        ),
    )(a_p, z_p, b_p)


# --------------------------------- JAX glue ---------------------------------- #
def build_norm_adj(edge_index, num_nodes, dtype=jnp.float32):
    """Dense GCN-normalized adjacency with self loops (gcn_norm semantics)."""
    src, dst = edge_index[0], edge_index[1]
    loop = jnp.arange(num_nodes, dtype=src.dtype)
    src = jnp.concatenate([src, loop])
    dst = jnp.concatenate([dst, loop])
    ew = jnp.ones(src.shape[0], dtype=dtype)

    deg = jnp.zeros((num_nodes,), dtype=dtype).at[dst].add(ew)
    deg_inv_sqrt = jnp.where(deg > 0, jax.lax.rsqrt(deg), 0.0)
    norm = deg_inv_sqrt[src] * ew * deg_inv_sqrt[dst]

    # out_i = sum_j A_hat[i, j] * x_j for edges j -> i  => scatter at [dst, src]
    return jnp.zeros((num_nodes, num_nodes), dtype=dtype).at[dst, src].add(norm)


def gcn_encoder(x, edge_index, w1, b1, w2, b2, compute_dtype=jnp.float32):
    """Two GCNConv layers. `compute_dtype=bf16` halves A_hat HBM traffic."""
    n, cin = x.shape
    h = w1.shape[0]
    cout = w2.shape[0]

    # Tiling: 512 rows/k for large graphs, else the whole lane-padded graph.
    tm = min(DEFAULT_TILE, _round_up(n, LANE))
    tk = tm
    n_p = _round_up(n, tm)

    # Lane-dense channel padding (zero columns are exact no-ops).
    cin_p = _round_up(cin, LANE)
    h_p = _round_up(h, LANE)
    cout_p = _round_up(cout, LANE)

    a = build_norm_adj(edge_index, n, dtype=jnp.float32)
    a_p = jnp.pad(a, ((0, n_p - n), (0, n_p - n))).astype(compute_dtype)
    x_p = jnp.pad(x, ((0, n_p - n), (0, cin_p - cin))).astype(compute_dtype)
    w1t_p = jnp.pad(w1.T, ((0, cin_p - cin), (0, h_p - h))).astype(compute_dtype)
    w2t_p = jnp.pad(w2.T, ((0, h_p - h), (0, cout_p - cout))).astype(compute_dtype)
    b1_p = jnp.pad(b1.reshape(1, h), ((0, 0), (0, h_p - h))).astype(jnp.float32)
    b2_p = jnp.pad(b2.reshape(1, cout), ((0, 0), (0, cout_p - cout))).astype(jnp.float32)

    # Layer 1: relu(A_hat @ (X W1^T) + b1)
    z1 = feature_transform(x_p, w1t_p, tm, compute_dtype)
    h1 = propagate(a_p, z1, b1_p, tm, tk, relu=True, out_dtype=compute_dtype)

    # Layer 2: A_hat @ (h W2^T) + b2
    z2 = feature_transform(h1, w2t_p, tm, compute_dtype)
    out_p = propagate(a_p, z2, b2_p, tm, tk, relu=False, out_dtype=x.dtype)

    return out_p[:n, :cout]


def glorot(key, shape, dtype=jnp.float32):
    fan_out, fan_in = shape
    limit = (6.0 / (fan_in + fan_out)) ** 0.5
    return jax.random.uniform(key, shape, dtype, minval=-limit, maxval=limit)


def reference(x, edge_index, w1, b1, w2, b2):
    a = build_norm_adj(edge_index, x.shape[0], dtype=x.dtype)
    h = jnp.maximum(a @ (x @ w1.T) + b1, 0.0)
    return a @ (h @ w2.T) + b2


if __name__ == "__main__":
    key = jax.random.PRNGKey(0)
    k_x, k_w1, k_w2 = jax.random.split(key, 3)

    num_nodes = 16
    in_channels = 8
    out_channels = 8
    hidden = 2 * out_channels  # 16

    # Node features.
    x = jax.random.normal(k_x, (num_nodes, in_channels), dtype=jnp.float32)

    # Deterministic small graph: ring + reverse edges, shape [2, E].
    src = jnp.arange(num_nodes, dtype=jnp.int32)
    dst = (src + 1) % num_nodes
    edge_index = jnp.stack(
        [jnp.concatenate([src, dst]), jnp.concatenate([dst, src])], axis=0
    )

    # Parameters (GCNConv: lin.weight [out, in] glorot, bias zeros).
    w1 = glorot(k_w1, (hidden, in_channels))
    b1 = jnp.zeros((hidden,), jnp.float32)
    w2 = glorot(k_w2, (out_channels, hidden))
    b2 = jnp.zeros((out_channels,), jnp.float32)

    ref = reference(x, edge_index, w1, b1, w2, b2)

    # Full-precision run: must match the reference tightly.
    out_f32 = gcn_encoder(x, edge_index, w1, b1, w2, b2, compute_dtype=jnp.float32)
    out_f32 = jax.block_until_ready(out_f32)
    assert out_f32.shape == (num_nodes, out_channels)
    assert jnp.allclose(out_f32, ref, atol=1e-5, rtol=1e-5)

    # bf16-streamed A_hat / activations (v6e/v7x bandwidth optimization),
    # f32 MXU accumulation: looser tolerance.
    out_bf16 = gcn_encoder(x, edge_index, w1, b1, w2, b2, compute_dtype=jnp.bfloat16)
    out_bf16 = jax.block_until_ready(out_bf16)
    rel_err = jnp.max(jnp.abs(out_bf16 - ref)) / (jnp.max(jnp.abs(ref)) + 1e-6)
    assert out_bf16.shape == (num_nodes, out_channels)
    assert rel_err < 5e-2

    print("KERNEL_OK")
</pallas_src>

<mosaic_0001>
module attributes {stable_mosaic.version = 11 : i64} {
  func.func @xw_kernel(%arg0: i32, %arg1: memref<128x128xf32, #tpu.memory_space<vmem>>, %arg2: memref<128x128xf32, #tpu.memory_space<vmem>>, %arg3: memref<128x128xf32, #tpu.memory_space<vmem>>) attributes {dimension_semantics = [#tpu.dimension_semantics<parallel>], iteration_bounds = array<i64: 1>, scalar_prefetch = 0 : i64, scratch_operands = 0 : i64, tpu.core_type = #tpu.core_type<tc>, window_params = [{transform_indices = @transform_0, window_bounds = array<i64: 128, 128>}, {pipeline_mode = #tpu.pipeline_mode<synchronous>, transform_indices = @transform_1, window_bounds = array<i64: 128, 128>}, {transform_indices = @transform_2, window_bounds = array<i64: 128, 128>}]} {
    %c0 = arith.constant 0 : index
    %c0_0 = arith.constant 0 : index
    %0 = vector.load %arg1[%c0, %c0_0] : memref<128x128xf32, #tpu.memory_space<vmem>>, vector<128x128xf32>
    %c0_1 = arith.constant 0 : index
    %c0_2 = arith.constant 0 : index
    %1 = vector.load %arg2[%c0_1, %c0_2] : memref<128x128xf32, #tpu.memory_space<vmem>>, vector<128x128xf32>
    %cst = arith.constant dense<0.000000e+00> : vector<128x128xf32>
    %2 = tpu.matmul %0, %1, %cst {dimension_numbers = #tpu.dot_dimension_numbers<[1], [0], [0], [1], [0, 0, 1, 1], [], []>} : vector<128x128xf32>, vector<128x128xf32>, vector<128x128xf32> -> vector<128x128xf32>
    %c0_3 = arith.constant 0 : index
    %c0_4 = arith.constant 0 : index
    %3 = vector.load %arg3[%c0_3, %c0_4] : memref<128x128xf32, #tpu.memory_space<vmem>>, vector<128x128xf32>
    tpu.vector_store %arg3[%c0_3, %c0_4], %2 {strides = array<i32>} : memref<128x128xf32, #tpu.memory_space<vmem>>, vector<128x128xf32>,
    return
  }
  func.func @transform_0(%arg0: i32) -> (i32, i32) {
    %c0_i32 = arith.constant 0 : i32
    %c0_i32_0 = arith.constant 0 : i32
    return %arg0, %c0_i32 : i32, i32
  }
  func.func @transform_1(%arg0: i32) -> (i32, i32) {
    %c0_i32 = arith.constant 0 : i32
    %c0_i32_0 = arith.constant 0 : i32
    %c0_i32_1 = arith.constant 0 : i32
    return %c0_i32, %c0_i32_0 : i32, i32
  }
  func.func @transform_2(%arg0: i32) -> (i32, i32) {
    %c0_i32 = arith.constant 0 : i32
    %c0_i32_0 = arith.constant 0 : i32
    return %arg0, %c0_i32 : i32, i32
  }
}

</mosaic_0001>

<bundles_post_ra>
// kernel: tpu_custom_call.1
= control target key start
LH: loop header
LB: loop body
LE: loop exit
PB: predicated region body
PF: predicated region fallthrough
CT: control target
= control target key end

     0   :  { %7 = vsyncpa [#allocation3], 0  ;;  %s529_s0 = inlined_call_operand.hbm [shape: f32[128,128], index: 0, kind: input, shape index: {}]   ;;  %s530_s1 = inlined_call_operand.hbm [shape: f32[128,128], index: 1, kind: input, shape index: {}]   ;;  %s531_s2 = inlined_call_operand.hbm [shape: f32[128,128], index: 2, kind: output, shape index: {}]  }
   0x1   :  { %8 = vsyncpa [#allocation6], 0 }
   0x2   :  { %9 = vsyncpa [#allocation4], 0  ;;  %s464_s9 = smov [#allocation2]   ;;  %s392_s13 = scalar_lea.hbm %s529_s0, 2048 }
   0x3   :  { %s15_s10 = sshll.u32 %s464_s9, 4  ;;  %p393_p0 = scmp.ne.s32.totalorder %s529_s0, %s392_s13  ;;  %s16_s10 = int_to_ptr.vmem [resolvable:$true] %s15_s10 }
   0x4   :  { %p396_p1 = scmp.lt.u32.totalorder %s392_s13, %s529_s0 }
   0x6   :  { %p398_p2 = pnand %p396_p1, %p393_p0 }
   0x8   :  { %401 = shalt.err (!%p398_p2)
}
   0x9   :  { %s402_s18 = scalar_lea.vmem %s16_s10, 2048  ;;  %p407_p4 = scmp.lt.s32.totalorder %s16_s10, %s16_s10 }
   0xa   :  { %p403_p3 = scmp.ne.s32.totalorder %s16_s10, %s402_s18  ;;  %p408_p5 = scmp.lt.s32.totalorder %s402_s18, %s402_s18 }
   0xc   :  { %p409_p6 = por %p408_p5, %p407_p4 }
   0xe   :  { %p410_p7 = pnand %p409_p6, %p403_p3 }
  0x10   :  { %413 = shalt.err (!%p410_p7)
}
  0x11   :  { %s465_s19 = smov 128   ;;  %s466_s20 = smov 8  }
  0x12   :  { %21 = dma.hbm_to_vmem [thread:$0]  %s529_s0, 2048, %s16_s10, [#allocation3], %s465_s19, %s465_s19, %s466_s20  }
  0x13   :  { %s467_s23 = smov [#allocation5]   ;;  %s414_s27 = scalar_lea.hbm %s530_s1, 2048 }
  0x14   :  { %s27_s24 = sshll.u32 %s467_s23, 4  ;;  %p415_p8 = scmp.ne.s32.totalorder %s530_s1, %s414_s27  ;;  %s28_s24 = int_to_ptr.vmem [resolvable:$true] %s27_s24 }
  0x15   :  { %p418_p9 = scmp.lt.u32.totalorder %s414_s27, %s530_s1 }
  0x17   :  { %p420_p10 = pnand %p418_p9, %p415_p8 }
  0x19   :  { %423 = shalt.err (!%p420_p10)
}
  0x1a   :  { %s424_s4 = scalar_lea.vmem %s28_s24, 2048  ;;  %p429_p12 = scmp.lt.s32.totalorder %s28_s24, %s28_s24 }
  0x1b   :  { %p425_p11 = scmp.ne.s32.totalorder %s28_s24, %s424_s4  ;;  %p430_p13 = scmp.lt.s32.totalorder %s424_s4, %s424_s4 }
  0x1d   :  { %p431_p0 = por %p430_p13, %p429_p12 }
  0x1f   :  { %p432_p1 = pnand %p431_p0, %p425_p11 }
  0x21   :  { %435 = shalt.err (!%p432_p1)
}
  0x22   :  { %33 = dma.hbm_to_vmem [thread:$0]  %s530_s1, 2048, %s28_s24, [#allocation6], %s465_s19, %s465_s19, %s466_s20  }
  0x23   :  { %458 = dma.done.wait [#allocation3], 2048  }
  0x24   :  { %459 = vsyncadd [#allocation3], 4294965248 }
  0x25   :  { %460 = dma.done.wait [#allocation6], 2048  }
  0x26   :  { %461 = vsyncadd [#allocation6], 4294965248  ;;  %v56_v0 = vld [vmem:[#allocation5] sm:$0xff]  ;;  %v57_v1 = vld [vmem:[#allocation5 + $0x8] sm:$0xff]  ;;  %s468_s1 = smov [#allocation7]  }
  0x27   :  { %v58_v2 = vld [vmem:[#allocation5 + $0x10] sm:$0xff]  ;;  %v339_v3 = vpack.c.bf16 %v57_v1, %v56_v0  ;;  %v59_v4 = vld [vmem:[#allocation5 + $0x18] sm:$0xff]  ;;  %v60_v6 = vld [vmem:[#allocation5 + $0x20] sm:$0xff]  ;;  %s238_s6 = sshll.u32 %s468_s1, 4  ;;  %s239_s6 = int_to_ptr.vmem [resolvable:$true] %s238_s6 }
  0x28   :  { %v343_v5 = vpack.c.bf16 %v59_v4, %v58_v2  ;;  %v61_v7 = vld [vmem:[#allocation5 + $0x28] sm:$0xff]  ;;  %v40_v9 = vld [vmem:[#allocation2] sm:$0xff]  ;;  %v62_v11 = vld [vmem:[#allocation5 + $0x30] sm:$0xff]  ;;  %s436_s7 = scalar_lea.vmem %s239_s6, 2048  ;;  %p441_p3 = scmp.lt.s32.totalorder %s239_s6, %s239_s6 }
  0x29   :  { %340 = vmatprep.subr.bf16.mxu0 %v339_v3  ;;  %371 = vmatprep.subr.bf16.mxu1 %v339_v3  ;;  %v347_v8 = vpack.c.bf16 %v61_v7, %v60_v6  ;;  %v48_v10 = vld [vmem:[#allocation2 + $0x40] sm:$0xff]  ;;  %v63_v12 = vld [vmem:[#allocation5 + $0x38] sm:$0xff]  ;;  %v65_v15 = vld [vmem:[#allocation5 + $0x48] sm:$0xff]  ;;  %p437_p2 = scmp.ne.s32.totalorder %s239_s6, %s436_s7  ;;  %p442_p4 = scmp.lt.s32.totalorder %s436_s7, %s436_s7 }
  0x2a   :  { %342 = vmatpush3.bf16.msra.mxu0 %v339_v3  ;;  %379 = vmatpush3.bf16.msra.mxu1 %v339_v3  ;;  %v351_v13 = vpack.c.bf16 %v63_v12, %v62_v11  ;;  %v64_v14 = vld [vmem:[#allocation5 + $0x40] sm:$0xff]  ;;  %v66_v17 = vld [vmem:[#allocation5 + $0x50] sm:$0xff]  ;;  %v67_v18 = vld [vmem:[#allocation5 + $0x58] sm:$0xff] }
  0x2b   :  { %344 = vmatprep.subr.bf16.mxu0 %v343_v5  ;;  %372 = vmatprep.subr.bf16.mxu1 %v343_v5  ;;  %v355_v16 = vpack.c.bf16 %v65_v15, %v64_v14  ;;  %v359_v19 = vpack.c.bf16 %v67_v18, %v66_v17  ;;  %v68_v20 = vld [vmem:[#allocation5 + $0x60] sm:$0xff]  ;;  %v69_v21 = vld [vmem:[#allocation5 + $0x68] sm:$0xff]  ;;  %v70_v23 = vld [vmem:[#allocation5 + $0x70] sm:$0xff]  ;;  %p443_p5 = por %p442_p4, %p441_p3 }
  0x2c   :  { %315 = vmatprep.mubr.f32.mxu0 %v40_v9  ;;  %327 = vmatprep.mubr.f32.mxu1 %v48_v10  ;;  %v363_v22 = vpack.c.bf16 %v69_v21, %v68_v20  ;;  %v71_v24 = vld [vmem:[#allocation5 + $0x78] sm:$0xff]  ;;  %v41_v26 = vld [vmem:[#allocation2 + $0x8] sm:$0xff]  ;;  %v42_v28 = vld [vmem:[#allocation2 + $0x10] sm:$0xff] }
  0x2d   :  { %v367_v25 = vpack.c.bf16 %v71_v24, %v70_v23  ;;  %v49_v27 = vld [vmem:[#allocation2 + $0x48] sm:$0xff]  ;;  %v50_v29 = vld [vmem:[#allocation2 + $0x50] sm:$0xff]  ;;  %v43_v30 = vld [vmem:[#allocation2 + $0x18] sm:$0xff]  ;;  %p444_p6 = pnand %p443_p5, %p437_p2 }
  0x2e   :  { %346 = vmatpush3.bf16.msra.mxu0 %v343_v5  ;;  %380 = vmatpush3.bf16.msra.mxu1 %v343_v5  ;;  %v51_v31 = vld [vmem:[#allocation2 + $0x58] sm:$0xff]  ;;  %v44_v32 = vld [vmem:[#allocation2 + $0x20] sm:$0xff]  ;;  %v45_v34 = vld [vmem:[#allocation2 + $0x28] sm:$0xff] }
  0x2f   :  { %348 = vmatprep.subr.bf16.mxu0 %v347_v8  ;;  %373 = vmatprep.subr.bf16.mxu1 %v347_v8  ;;  %v52_v33 = vld [vmem:[#allocation2 + $0x60] sm:$0xff]  ;;  %v53_v35 = vld [vmem:[#allocation2 + $0x68] sm:$0xff]  ;;  %v46_v36 = vld [vmem:[#allocation2 + $0x30] sm:$0xff] }
  0x30   :  { %v54_v37 = vld [vmem:[#allocation2 + $0x70] sm:$0xff]  ;;  %v47_v38 = vld [vmem:[#allocation2 + $0x38] sm:$0xff] }
  0x31   :  { %v55_v39 = vld [vmem:[#allocation2 + $0x78] sm:$0xff] }
  0x32   :  { %350 = vmatpush3.bf16.msra.mxu0 %v347_v8  ;;  %381 = vmatpush3.bf16.msra.mxu1 %v347_v8 }
  0x33   :  { %352 = vmatprep.subr.bf16.mxu0 %v351_v13  ;;  %374 = vmatprep.subr.bf16.mxu1 %v351_v13 }
  0x36   :  { %354 = vmatpush3.bf16.msra.mxu0 %v351_v13  ;;  %382 = vmatpush3.bf16.msra.mxu1 %v351_v13 }
  0x37   :  { %356 = vmatprep.subr.bf16.mxu0 %v355_v16  ;;  %375 = vmatprep.subr.bf16.mxu1 %v355_v16 }
  0x3a   :  { %358 = vmatpush3.bf16.msra.mxu0 %v355_v16  ;;  %383 = vmatpush3.bf16.msra.mxu1 %v355_v16 }
  0x3b   :  { %360 = vmatprep.subr.bf16.mxu0 %v359_v19  ;;  %376 = vmatprep.subr.bf16.mxu1 %v359_v19 }
  0x3e   :  { %362 = vmatpush3.bf16.msra.mxu0 %v359_v19  ;;  %384 = vmatpush3.bf16.msra.mxu1 %v359_v19 }
  0x3f   :  { %364 = vmatprep.subr.bf16.mxu0 %v363_v22  ;;  %377 = vmatprep.subr.bf16.mxu1 %v363_v22 }
  0x42   :  { %366 = vmatpush3.bf16.msra.mxu0 %v363_v22  ;;  %385 = vmatpush3.bf16.msra.mxu1 %v363_v22 }
  0x43   :  { %368 = vmatprep.subr.bf16.mxu0 %v367_v25  ;;  %378 = vmatprep.subr.bf16.mxu1 %v367_v25 }
  0x46   :  { %370 = vmatpush3.bf16.msra.mxu0 %v367_v25  ;;  %386 = vmatpush3.bf16.msra.mxu1 %v367_v25 }
  0x49   :  { %316 = vmatmul.mubr.f32.vlgmr.msra.gmra.mrb[0].mxu0 %v41_v26  ;;  %328 = vmatmul.mubr.f32.vlgmr.msra.gmra.mrb[0].mxu1 %v49_v27 }
  0x4a   :  { %318 = vmatprep.mubr.f32.mxu0 %v42_v28  ;;  %330 = vmatprep.mubr.f32.mxu1 %v50_v29 }
  0x4d   :  { %319 = vmatmul.mubr.f32.gmra.mrb[2].mxu0 %v43_v30  ;;  %331 = vmatmul.mubr.f32.gmra.mrb[2].mxu1 %v51_v31 }
  0x4e   :  { %321 = vmatprep.mubr.f32.mxu0 %v44_v32  ;;  %333 = vmatprep.mubr.f32.mxu1 %v52_v33 }
  0x51   :  { %322 = vmatmul.mubr.f32.gmra.mrb[4].mxu0 %v45_v34  ;;  %334 = vmatmul.mubr.f32.gmra.mrb[4].mxu1 %v53_v35 }
  0x52   :  { %324 = vmatprep.mubr.f32.mxu0 %v46_v36  ;;  %336 = vmatprep.mubr.f32.mxu1 %v54_v37 }
  0x55   :  { %325 = vmatmul.mubr.f32.gmra.mrb[6].mxu0 %v47_v38  ;;  %337 = vmatmul.mubr.f32.gmra.mrb[6].mxu1 %v55_v39 }
 0x11c   :  { %v317_v40 = vpop.f32.mrb[0].mxu0  ;;  %v329_v41 = vpop.f32.mrb[0].mxu1 }
 0x11d   :  { %218 = vst [vmem:[#allocation7 + $0x8] sm:$0xff] %v317_v40  ;;  %226 = vst [vmem:[#allocation7 + $0x48] sm:$0xff] %v329_v41  ;;  %v138_v42 = vpop.f32.mrb[1].mxu0  ;;  %v178_v43 = vpop.f32.mrb[1].mxu1 }
 0x11e   :  { %217 = vst [vmem:[#allocation7] sm:$0xff] %v138_v42  ;;  %225 = vst [vmem:[#allocation7 + $0x40] sm:$0xff] %v178_v43 }
 0x120   :  { %v320_v44 = vpop.f32.mrb[2].mxu0  ;;  %v332_v45 = vpop.f32.mrb[2].mxu1 }
 0x121   :  { %220 = vst [vmem:[#allocation7 + $0x18] sm:$0xff] %v320_v44  ;;  %228 = vst [vmem:[#allocation7 + $0x58] sm:$0xff] %v332_v45  ;;  %v148_v46 = vpop.f32.mrb[3].mxu0  ;;  %v188_v47 = vpop.f32.mrb[3].mxu1 }
 0x122   :  { %219 = vst [vmem:[#allocation7 + $0x10] sm:$0xff] %v148_v46  ;;  %227 = vst [vmem:[#allocation7 + $0x50] sm:$0xff] %v188_v47 }
 0x124   :  { %v323_v48 = vpop.f32.mrb[4].mxu0  ;;  %v335_v49 = vpop.f32.mrb[4].mxu1 }
 0x125   :  { %222 = vst [vmem:[#allocation7 + $0x28] sm:$0xff] %v323_v48  ;;  %230 = vst [vmem:[#allocation7 + $0x68] sm:$0xff] %v335_v49  ;;  %v158_v50 = vpop.f32.mrb[5].mxu0  ;;  %v198_v51 = vpop.f32.mrb[5].mxu1 }
 0x126   :  { %221 = vst [vmem:[#allocation7 + $0x20] sm:$0xff] %v158_v50  ;;  %229 = vst [vmem:[#allocation7 + $0x60] sm:$0xff] %v198_v51 }
 0x128   :  { %v326_v52 = vpop.f32.mrb[6].mxu0  ;;  %v338_v53 = vpop.f32.mrb[6].mxu1 }
 0x129   :  { %224 = vst [vmem:[#allocation7 + $0x38] sm:$0xff] %v326_v52  ;;  %232 = vst [vmem:[#allocation7 + $0x78] sm:$0xff] %v338_v53  ;;  %v168_v54 = vpop.f32.mrb[7].mxu0  ;;  %v208_v55 = vpop.f32.mrb[7].mxu1 }
 0x12a   :  { %223 = vst [vmem:[#allocation7 + $0x30] sm:$0xff] %v168_v54  ;;  %231 = vst [vmem:[#allocation7 + $0x70] sm:$0xff] %v208_v55 }
 0x12b   :  { %447 = shalt.err (!%p444_p6)
}
 0x12c   :  { %s448_s10 = scalar_lea.hbm %s531_s2, 2048 }
 0x12d   :  { %p449_p7 = scmp.ne.s32.totalorder %s531_s2, %s448_s10  ;;  %p452_p8 = scmp.lt.u32.totalorder %s448_s10, %s531_s2 }
 0x12f   :  { %p454_p9 = pnand %p452_p8, %p449_p7 }
 0x131   :  { %457 = shalt.err (!%p454_p9)
}
 0x132   :  { %244 = dma.vmem_to_hbm [thread:$0]  %s239_s6, 2048, %s531_s2, [#allocation4], %s465_s19, %s465_s19, %s466_s20  }
 0x133   :  { %462 = dma.done.wait [#allocation4], 2048  }
 0x134   :  { %463 = vsyncadd [#allocation4], 4294965248 }
 0x135   :  { %248 = vsyncpa [#allocation3], 1 }
 0x136   :  { %249 = vsyncpa [#allocation6], 1 }
 0x137   :  { %250 = vsyncpa [#allocation4], 1 }

</bundles_post_ra>
